<compile_context>
chip_gen: v5e
topology: v5e:2x2
jax: 0.10.0
libtpu: 0.0.40
codegen_flags: <defaults>
</compile_context>

<pallas_src>
import functools

import jax
import jax.numpy as jnp
from jax import lax
from jax.experimental import pallas as pl
from jax.experimental.pallas import tpu as pltpu

_NUM_CORE_SPLITS = 2   # v7x has 2 TCs/chip; extra axis is a cheap serial loop on v5e/v6e
_SUBLANE = 8
_LANE = 128


def _round_up(x, m):
    return ((x + m - 1) // m) * m


def _nll_loss_kernel(pred_ref, tgt_ref, out_ref, acc_ref, *,
                     n_rows, n_per_core, block_rows):
    c = pl.program_id(0)   # core-split index ("parallel")
    i = pl.program_id(1)   # row-tile index  ("arbitrary" reduction axis)

    @pl.when(i == 0)
    def _init():
        acc_ref[...] = jnp.zeros_like(acc_ref)

    # Upcast right after load (v5e VPU has no bf16 ALU path); accumulate in f32.
    pred = pred_ref[...].astype(jnp.float32)       # (TN, C)
    tgt = tgt_ref[...]                             # (TN, 1) int32
    tn, nc = pred.shape

    # One-hot select of pred[r, target[r]]: VPU compare/select, no gather.
    col_ids = lax.broadcasted_iota(jnp.int32, (tn, nc), dimension=1)
    onehot = col_ids == tgt                        # broadcasts (TN,1) -> (TN,C)

    # Mask rows outside the real array (last partial tile, and the clamped
    # duplicate tiles handed to the second core split).
    tile_idx = c * n_per_core + i                  # logical (unclamped) tile index
    row_ids = lax.broadcasted_iota(jnp.int32, (tn, nc), dimension=0) + tile_idx * block_rows
    valid = row_ids < n_rows

    # Pure element-wise accumulate per tile; hides under the DMA.
    acc_ref[...] += jnp.where(onehot & valid, pred, 0.0)

    # One cross-lane reduction per core split, only in the finalize step.
    @pl.when(i == pl.num_programs(1) - 1)
    def _finalize():
        total = jnp.sum(acc_ref[...])
        out_ref[...] = jnp.zeros_like(out_ref) + total   # broadcast into (8,128) block


def nll_loss_pallas(pred, target, trans_feat=None, *, block_rows=None):
    """F.nll_loss(pred, target) with reduction='mean'; trans_feat ignored."""
    del trans_feat  # unused in the reference forward
    n, c = pred.shape
    target2d = target.astype(jnp.int32).reshape(n, 1)

    itemsize = jnp.dtype(pred.dtype).itemsize
    # Sublane granularity: 8 for 4-byte, 16 for 2-byte, 32 for 1-byte dtypes.
    sub = _SUBLANE * max(1, 4 // itemsize)

    # Row-tile size: multiple of `sub`, accumulator capped at ~4 MiB so the
    # double-buffered inputs + scratch comfortably fit v7x's smaller VMEM.
    if block_rows is None:
        budget_rows = max(sub, (4 * 1024 * 1024) // (max(c, 1) * 4))
        block_rows = min(1024, _round_up(min(n, budget_rows), sub))
    block_rows = max(sub, _round_up(block_rows, sub))

    n_tiles = pl.cdiv(n, block_rows)
    n_per_core = pl.cdiv(n_tiles, _NUM_CORE_SPLITS)
    grid = (_NUM_CORE_SPLITS, n_per_core)

    def row_block(ci, ti):
        # Clamp so the second core's overhang tiles stay in bounds; their rows
        # are masked inside the kernel via the logical (unclamped) tile index.
        return (jnp.minimum(ci * n_per_core + ti, n_tiles - 1), 0)

    kernel = functools.partial(
        _nll_loss_kernel, n_rows=n, n_per_core=n_per_core, block_rows=block_rows)

    cost = pl.CostEstimate(
        flops=3 * n * c,
        transcendentals=0,
        bytes_accessed=n * c * itemsize + n * 4 + _NUM_CORE_SPLITS * _SUBLANE * _LANE * 4,
    )

    partials = pl.pallas_call(
        kernel,
        out_shape=jax.ShapeDtypeStruct((_NUM_CORE_SPLITS * _SUBLANE, _LANE), jnp.float32),
        grid_spec=pltpu.PrefetchScalarGridSpec(
            num_scalar_prefetch=0,
            grid=grid,
            in_specs=[
                pl.BlockSpec((block_rows, c), row_block),   # pred tile (native dtype)
                pl.BlockSpec((block_rows, 1), row_block),   # target tile (int32)
            ],
            out_specs=pl.BlockSpec((_SUBLANE, _LANE), lambda ci, ti: (ci, 0)),
            scratch_shapes=[pltpu.VMEM((block_rows, c), jnp.float32)],
        ),
        compiler_params=pltpu.CompilerParams(
            dimension_semantics=("parallel", "arbitrary"),
            vmem_limit_bytes=32 * 1024 * 1024,
        ),
        cost_estimate=cost,
    )(pred, target2d)

    # Each core split broadcast its partial sum over its own (8,128) output block.
    per_core = partials[::_SUBLANE, 0]
    # TODO(synk): F.nll_loss's ignore_index=-100 / class-weight arguments are not
    # modeled; this is a plain mean over all N rows (matches default usage).
    return -jnp.sum(per_core) / jnp.float32(n)


if __name__ == "__main__":
    key = jax.random.PRNGKey(0)
    k1, k2, k3, k4, k5 = jax.random.split(key, 5)

    # Small case matching the module usage: N samples, C classes.
    N, C = 8, 16
    logits = jax.random.normal(k1, (N, C), dtype=jnp.float32)
    pred = jax.nn.log_softmax(logits, axis=-1)            # log-probabilities
    target = jax.random.randint(k2, (N,), 0, C, dtype=jnp.int32)
    trans_feat = jax.random.normal(k3, (N, 3, 3), dtype=jnp.float32)  # unused

    loss = nll_loss_pallas(pred, target, trans_feat)
    jax.block_until_ready(loss)
    ref = -jnp.mean(pred[jnp.arange(N), target])
    assert jnp.allclose(loss, ref, atol=1e-6, rtol=1e-6), (loss, ref)

    # Multi-tile case: exercises the grid, row masking and the 2-way core split.
    N2, C2 = 300, 40
    logits2 = jax.random.normal(k4, (N2, C2), dtype=jnp.float32)
    pred2 = jax.nn.log_softmax(logits2, axis=-1)
    target2 = jax.random.randint(k5, (N2,), 0, C2, dtype=jnp.int32)

    loss2 = nll_loss_pallas(pred2, target2, None, block_rows=64)
    jax.block_until_ready(loss2)
    ref2 = -jnp.mean(pred2[jnp.arange(N2), target2])
    assert jnp.allclose(loss2, ref2, atol=1e-5, rtol=1e-5), (loss2, ref2)

    # Native-bf16 input path (half the HBM traffic; f32 accumulation in-kernel).
    pred2_bf16 = pred2.astype(jnp.bfloat16)
    loss3 = nll_loss_pallas(pred2_bf16, target2, None, block_rows=64)
    jax.block_until_ready(loss3)
    ref3 = -jnp.mean(pred2_bf16.astype(jnp.float32)[jnp.arange(N2), target2])
    assert jnp.allclose(loss3, ref3, atol=1e-3, rtol=1e-3), (loss3, ref3)

    print("KERNEL_OK")
</pallas_src>

<mosaic_0001>
module attributes {stable_mosaic.version = 11 : i64} {
  func.func @_nll_loss_kernel(%arg0: i32, %arg1: i32, %arg2: memref<8x16xf32, #tpu.memory_space<vmem>>, %arg3: memref<8x1xi32, #tpu.memory_space<vmem>>, %arg4: memref<8x128xf32, #tpu.memory_space<vmem>>, %arg5: memref<8x16xf32, #tpu.memory_space<vmem>>) attributes {dimension_semantics = [#tpu.dimension_semantics<parallel>, #tpu.dimension_semantics<arbitrary>], iteration_bounds = array<i64: 2, 1>, scalar_prefetch = 0 : i64, scratch_operands = 1 : i64, tpu.core_type = #tpu.core_type<tc>, window_params = [{transform_indices = @transform_0, window_bounds = array<i64: 8, 16>}, {transform_indices = @transform_1, window_bounds = array<i64: 8, 1>}, {transform_indices = @transform_2, window_bounds = array<i64: 8, 128>}]} {
    %c0_i32 = arith.constant 0 : i32
    %0 = arith.cmpi eq, %arg1, %c0_i32 : i32
    %1 = arith.extui %0 : i1 to i32
    %c0_i32_0 = arith.constant 0 : i32
    %2 = arith.cmpi ne, %1, %c0_i32_0 : i32
    scf.if %2 {
      %cst_11 = arith.constant 0.000000e+00 : f32
      %25 = vector.broadcast %cst_11 : f32 to vector<8x16xf32>
      %c0_12 = arith.constant 0 : index
      %c0_13 = arith.constant 0 : index
      %26 = vector.load %arg5[%c0_12, %c0_13] : memref<8x16xf32, #tpu.memory_space<vmem>>, vector<8x16xf32>
      tpu.vector_store %arg5[%c0_12, %c0_13], %25 {strides = array<i32>} : memref<8x16xf32, #tpu.memory_space<vmem>>, vector<8x16xf32>,
    } else {
    }
    %c0 = arith.constant 0 : index
    %c0_1 = arith.constant 0 : index
    %3 = vector.load %arg2[%c0, %c0_1] : memref<8x16xf32, #tpu.memory_space<vmem>>, vector<8x16xf32>
    %c0_2 = arith.constant 0 : index
    %c0_3 = arith.constant 0 : index
    %4 = vector.load %arg3[%c0_2, %c0_3] : memref<8x1xi32, #tpu.memory_space<vmem>>, vector<8x1xi32>
    %5 = tpu.iota {dimensions = array<i32: 1>} : vector<8x16xi32>
    %6 = vector.broadcast %4 : vector<8x1xi32> to vector<8x16xi32>
    %7 = arith.cmpi eq, %5, %6 : vector<8x16xi32>
    %c1_i32 = arith.constant 1 : i32
    %8 = arith.muli %arg0, %c1_i32 : i32
    %9 = arith.addi %8, %arg1 : i32
    %10 = tpu.iota {dimensions = array<i32: 0>} : vector<8x16xi32>
    %c8_i32 = arith.constant 8 : i32
    %11 = arith.muli %9, %c8_i32 : i32
    %12 = vector.broadcast %11 : i32 to vector<8x16xi32>
    %13 = arith.addi %10, %12 : vector<8x16xi32>
    %c8_i32_4 = arith.constant 8 : i32
    %14 = vector.broadcast %c8_i32_4 : i32 to vector<8x16xi32>
    %15 = arith.cmpi slt, %13, %14 : vector<8x16xi32>
    %c0_5 = arith.constant 0 : index
    %c0_6 = arith.constant 0 : index
    %16 = vector.load %arg5[%c0_5, %c0_6] : memref<8x16xf32, #tpu.memory_space<vmem>>, vector<8x16xf32>
    %17 = arith.andi %7, %15 : vector<8x16xi1>
    %cst = arith.constant 0.000000e+00 : f32
    %18 = vector.broadcast %cst : f32 to vector<8x16xf32>
    %19 = arith.select %17, %3, %18 : vector<8x16xi1>, vector<8x16xf32>
    %20 = arith.addf %16, %19 : vector<8x16xf32>
    %c0_7 = arith.constant 0 : index
    %c0_8 = arith.constant 0 : index
    %21 = vector.load %arg5[%c0_7, %c0_8] : memref<8x16xf32, #tpu.memory_space<vmem>>, vector<8x16xf32>
    tpu.vector_store %arg5[%c0_7, %c0_8], %20 {strides = array<i32>} : memref<8x16xf32, #tpu.memory_space<vmem>>, vector<8x16xf32>,
    %c0_i32_9 = arith.constant 0 : i32
    %22 = arith.cmpi eq, %arg1, %c0_i32_9 : i32
    %23 = arith.extui %22 : i1 to i32
    %c0_i32_10 = arith.constant 0 : i32
    %24 = arith.cmpi ne, %23, %c0_i32_10 : i32
    scf.if %24 {
      %c0_11 = arith.constant 0 : index
      %c0_12 = arith.constant 0 : index
      %25 = vector.load %arg5[%c0_11, %c0_12] : memref<8x16xf32, #tpu.memory_space<vmem>>, vector<8x16xf32>
      %26 = vector.shape_cast %25 : vector<8x16xf32> to vector<1x8x16xf32>
      %cst_13 = arith.constant dense<0.000000e+00> : vector<1xf32>
      %27 = vector.multi_reduction <add>, %26, %cst_13 [1, 2] : vector<1x8x16xf32> to vector<1xf32>
      %28 = vector.shape_cast %27 : vector<1xf32> to vector<1x1x1xf32>
      %29 = vector.extract %28[0, 0, 0] : f32 from vector<1x1x1xf32>
      %cst_14 = arith.constant 0.000000e+00 : f32
      %30 = vector.broadcast %cst_14 : f32 to vector<8x128xf32>
      %31 = vector.broadcast %29 : f32 to vector<8x128xf32>
      %32 = arith.addf %30, %31 : vector<8x128xf32>
      %c0_15 = arith.constant 0 : index
      %c0_16 = arith.constant 0 : index
      %33 = vector.load %arg4[%c0_15, %c0_16] : memref<8x128xf32, #tpu.memory_space<vmem>>, vector<8x128xf32>
      tpu.vector_store %arg4[%c0_15, %c0_16], %32 {strides = array<i32>} : memref<8x128xf32, #tpu.memory_space<vmem>>, vector<8x128xf32>,
    } else {
    }
    return
  }
  func.func @transform_0(%arg0: i32, %arg1: i32) -> (i32, i32) {
    %c1_i32 = arith.constant 1 : i32
    %0 = arith.muli %arg0, %c1_i32 : i32
    %1 = arith.addi %0, %arg1 : i32
    %c0_i32 = arith.constant 0 : i32
    %2 = arith.minsi %1, %c0_i32 : i32
    %c0_i32_0 = arith.constant 0 : i32
    %c0_i32_1 = arith.constant 0 : i32
    return %2, %c0_i32_0 : i32, i32
  }
  func.func @transform_1(%arg0: i32, %arg1: i32) -> (i32, i32) {
    %c1_i32 = arith.constant 1 : i32
    %0 = arith.muli %arg0, %c1_i32 : i32
    %1 = arith.addi %0, %arg1 : i32
    %c0_i32 = arith.constant 0 : i32
    %2 = arith.minsi %1, %c0_i32 : i32
    %c0_i32_0 = arith.constant 0 : i32
    %c0_i32_1 = arith.constant 0 : i32
    return %2, %c0_i32_0 : i32, i32
  }
  func.func @transform_2(%arg0: i32, %arg1: i32) -> (i32, i32) {
    %c0_i32 = arith.constant 0 : i32
    %c0_i32_0 = arith.constant 0 : i32
    return %arg0, %c0_i32 : i32, i32
  }
}

</mosaic_0001>

<bundles_post_ra>
// kernel: tpu_custom_call.1
= control target key start
LH: loop header
LB: loop body
LE: loop exit
PB: predicated region body
PF: predicated region fallthrough
CT: control target
= control target key end

     0   :  { %7 = vsyncpa [#allocation4], 0  ;;  %s628_s0 = inlined_call_operand.vmem [shape: f32[8,16], index: 0, kind: input, shape index: {}]   ;;  %s629_s1 = inlined_call_operand.vmem [shape: s32[8,1], index: 1, kind: input, shape index: {}]   ;;  %s630_s2 = inlined_call_operand.hbm [shape: f32[16,128], index: 2, kind: output, shape index: {}]  }
   0x1   :  { %9 = vsyncpa [#allocation4 + $0x1], 0  ;;  %s525_s9 = smov 0   ;;  %s527_s10 = smov 0  }
   0x2   :  { %s529_s11 = smov 0   ;;  %s531_s12 = smov 0  }
   0x3   :  { %s533_s13 = smov 0   ;;  %s535_s14 = smov 0  }
   0x4 LB: > { %s349_s15 = sadd.s32 4294967295, %s506_s14   ;;  %s350_s16 = sadd.s32 4294967294, %s506_s14   ;;  %s506_s14 = sphi %s535_s14, %s15_s14   ;;  %s502_s13 = sphi %s533_s13, %s637_s13   ;;  %s498_s12 = sphi %s531_s12, %s636_s12   ;;  %s494_s11 = sphi %s529_s11, %s635_s11   ;;  %s490_s10 = sphi %s527_s10, %s634_s10   ;;  %s486_s9 = sphi %s525_s9, %s633_s9  }
   0x5   : > { %s27_s17 = sadd.s32 1, %s502_s13  ;;  %s98_s18 = sadd.s32 1, %s494_s11 }
   0x6   : > { %p29_p0 = scmp.ge.s32.totalorder %s27_s17, 2  ;;  %p108_p1 = scmp.ne.s32.totalorder %s494_s11, %s490_s10 }
   0x7   : > { %p109_p2 = scmp.eq.s32.totalorder %s349_s15, 1  ;;  %p114_p3 = scmp.ne.s32.totalorder %s490_s10, %s486_s9 }
   0x8   : > { %s639_s17 = smov (%p29_p0, %s27_s17), 0  ;;  %p115_p5 = scmp.eq.s32.totalorder %s350_s16, 1 }
   0x9   : > { %p565_p4 = por %p109_p2, %p108_p1  ;;  %s95_s20 = ssub.s32 %s502_s13, %s639_s17 }
   0xa   : > { %p353_p6 = scmp.ge.s32.totalorder %s506_s14, 1  ;;  %p96_p7 = scmp.eq.s32.totalorder %s95_s20, 0 }
   0xb   : > { %p572_p8 = por %p115_p5, %p114_p3  ;;  %p159_p9 = scmp.lt.s32.totalorder %s506_s14, 3 }
   0xc   : > { %s578_s22 = scalar_select %p96_p7, %s494_s11, %s98_s18  }
   0xd   : > { %p160_p10 = pnand %p353_p6, %p159_p9 }
   0xe   : > { %p191_p11 = scmp.lt.s32.totalorder (!%p160_p10), %s498_s12, 0  ;;  %s363_s28 = sshll.u32 (!%p160_p10), %s498_s12, 3 }
   0xf   : > { %163 = sbr.rel (%p160_p10) target bundleno = 337 (0x151), region = 28  ;;  %s187_s4 = sand.u32 (!%p160_p10), 1, %s490_s10  }
  0x10   : > { %s354_s5 = sshll.u32 (!%p160_p10), %s187_s4, 3  ;;  %s265_s8 = scalar_lea.hbm (!%p160_p10), %s630_s2, %s363_s28 }
  0x11   : > { %s269_s16 = sshll.u32 (!%p160_p10), %s265_s8, 4  ;;  %s255_s20 = scalar_lea.sflag (!%p160_p10), [#allocation4], %s187_s4  ;;  %s270_s16 = int_to_ptr.hbm [resolvable:$true] %s269_s16 }
  0x14   : > { %v508_v0 = vmov 0   ;;  %s192_s23 = scalar_select %p191_p11, %s498_s12, 0  ;;  %vm214_vm0 = vcmask 130048   ;;  %v509_v2 = vmov 0.0   ;;  %v218_v3 = vlaneseq }
  0x15   : > { %427 = vset.pattern.permute.xlu0 %v508_v0  ;;  %215 = vst.msk [vmem:[#allocation2] sm:$0xff] %vm214_vm0, %v509_v2  ;;  %v228_v5 = vstv %s363_s28  ;;  %s189_s12 = scalar_lea.vmem [#allocation3], %s354_s5 }
  0x16   : > { %s641_s23 = smov (!%p191_p11, %s192_s23), 0  ;;  %v226_v4 = vshrl.u32 %v218_v3, 7  ;;  %v219_v7 = vand.u32 127, %v218_v3  ;;  %s267_s15 = sshll.u32 %s189_s12, 4  ;;  %s268_s15 = int_to_ptr.vmem [resolvable:$true] %s267_s15 }
  0x17   : > { %s358_s24 = sshll.u32 %s641_s23, 3  ;;  %s442_s23 = sshra.s32 %s270_s16, 4  ;;  %s443_s23 = int_to_ptr.hbm [resolvable:$true] %s442_s23 }
  0x18   : > { %s206_s27 = scalar_lea.vmem %s629_s1, %s358_s24  ;;  %v229_v6 = vadd.s32 %v228_v5, %v226_v4  ;;  %s196_s3 = scalar_lea.vmem %s628_s0, %s358_s24 }
  0x19   : > { %v217_v1 = vld [vmem:[%s206_s27] sm:$0xff]  ;;  %s444_s24 = scalar_lea.hbm %s443_s23, 8  ;;  %s448_s27 = scalar_lea.hbm %s630_s2, 16 }
  0x1a   : > { %221 = vperm.xlu0 %427, %v217_v1   ;;  %vm230_vm1 = vcmp.lt.s32.totalorder %v229_v6, 8  ;;  %v216_v8 = vld [vmem:[%s196_s3] sm:$0xff]  ;;  %p445_p12 = scmp.ne.s32.totalorder %s443_s23, %s444_s24  ;;  %p449_p1 = scmp.lt.s32.totalorder %s443_s23, %s630_s2 }
  0x1b   : > { %p450_p2 = scmp.lt.s32.totalorder %s448_s27, %s444_s24 }
  0x1c   : > { %v231_v10 = vld [vmem:[#allocation2] sm:$0xff]  ;;  %p446_p13 = pnand %p445_p12, %p565_p4 }
  0x1d   : > { %p451_p3 = por %p450_p2, %p449_p1 }
  0x1e   : > { %p447_p0 = pneg %p446_p13 }
  0x20   : > { %p452_p5 = pnand %p451_p3, %p447_p0 }
  0x8c   : > { %v222_v9 = vpop.permute.xlu0 %221 }
  0x8d   : > { %vm223_vm2 = vcmp.eq.s32.totalorder %v219_v7, %v222_v9 }
  0x8e   : > { %vm232_vm3 = vmand %vm223_vm2, %vm230_vm1 }
  0x8f   : > { %v233_v11 = vsel %vm232_vm3, %v216_v8, 0.0 }
  0x90   : > { %v234_v12 = vadd.f32 %v233_v11, %v231_v10 }
  0x92   : > { %236 = vst.msk [vmem:[#allocation2] sm:$0xff] %vm214_vm0, %v234_v12 }
  0x99   : > { %v240_v13 = vld [vmem:[#allocation2] sm:$0xff] }
  0x9a   : > { %v241_v14 = vsel %vm214_vm0, %v240_v13, 0.0 }
  0x9b   : > { %242 = vadd.xlane.f32.xlu0 %v241_v14 }
 0x10e   : > { %v243_v15 = vpop.xlane.xlu0 %242 }
 0x10f   : > { %v244_v16 = vrot.slane %v243_v15, 4 }
 0x111   : > { %v245_v17 = vadd.f32 %v244_v16, %v243_v15 }
 0x113   : > { %v246_v18 = vrot.slane %v245_v17, 2 }
 0x115   : > { %v247_v19 = vadd.f32 %v246_v18, %v245_v17 }
 0x117   : > { %v248_v20 = vrot.slane %v247_v19, 1 }
 0x119   : > { %v249_v21 = vadd.f32 %v248_v20, %v247_v19 }
 0x11b   : > { %368 = vpush %v249_v21 }
 0x14c   : > { %s369_s18 = spop %368 }
 0x14d   : > { %v251_v22 = vstv %s369_s18 }
 0x14e   : > { %253 = vst [vmem:[%s189_s12] sm:$0xff] %v251_v22 }
 0x14f   : > { %455 = shalt.err (!%p452_p5)
}
 0x150   : > { %370 = dma.vmem_to_hbm [thread:$0]  (%p565_p4), %s268_s15, 128, %s270_s16, %s255_s20  }
 0x151 PF: > { %p376_p6 = scmp.ge.s32.totalorder %s506_s14, 2  ;;  %s281_s30 = sand.u32 1, %s486_s9  }
 0x152   : > { %s282_s3 = scalar_lea.sflag [#allocation4], %s281_s30 }
 0x153   : > { %p373_p7 = pnand %p376_p6, %p572_p8 }
 0x155   : > { %p374_p9 = pneg %p373_p7 }
 0x157   : > { %481 = dma.done.wait (%p374_p9), %s282_s3, 128  }
 0x158   : > { %483 = vsyncadd (%p374_p9), %s282_s3, 4294967168  ;;  %s15_s14 = sadd.s32 1, %s506_s14   ;;  %s633_s9 = smov %s490_s10 }
 0x159   : > { %p12_p10 = scmp.ge.s32.totalorder %s15_s14, 4   ;;  %s634_s10 = smov %s494_s11 }
 0x15a   : > { %s635_s11 = smov %s578_s22  ;;  %s636_s12 = smov %s502_s13 }
 0x15b   : > { %s637_s13 = smov %s639_s17  ;;  %14 = sbr.rel (!%p12_p10) target bundleno = 4 (0x4), region = 74 }
 0x160   :  { %288 = vsyncpa [#allocation4], 1 }
 0x161   :  { %290 = vsyncpa [#allocation4 + $0x1], 1 }

</bundles_post_ra>
